<compile_context>
chip_gen: v7x
topology: tpu7x:2x2x1
jax: 0.10.0
libtpu: 0.0.40
codegen_flags: <defaults>
</compile_context>

<pallas_src>
import jax
import jax.numpy as jnp
from jax.experimental import pallas as pl
from jax.experimental.pallas import tpu as pltpu

# f32 parity for wrapper-side operator construction and the reference scan.
jax.config.update("jax_default_matmul_precision", "highest")


def ssm_kernel(z_ref, g_ref, x_ref):
    """z: (batch, nx + T*(nu+nd)); g: (nx + T*(nu+nd), T*nx); x: (batch, T*nx).

    Whole T-step recurrence realized as one lane-dense MXU matmul X = Z @ G.
    """
    x_ref[...] = jax.lax.dot_general(
        z_ref[...], g_ref[...],
        (((1,), (0,)), ((), ())),
        preferred_element_type=jnp.float32,
        precision=jax.lax.Precision.HIGHEST,
    )


def _effective_A(a_weight, a_scalar):
    # ConstrainedLinear.effective_W(): forward is x @ A_eff with
    # A_eff = ((1 - 0.1*sigmoid(scalar)) * softmax(weight, dim=1)).T
    M = (1.0 - 0.1 * jax.nn.sigmoid(a_scalar)) * jax.nn.softmax(a_weight, axis=1)
    return M.T


def ssm_forward(x0, U, D, a_weight, a_scalar, b_weight, e_weight):
    T, batch, nu = U.shape
    nd = D.shape[-1]
    nx = x0.shape[-1]
    nin = nu + nd
    f32 = jnp.float32

    A = _effective_A(a_weight.astype(f32), a_scalar.astype(f32))        # (nx, nx)
    WT = jnp.concatenate([b_weight, e_weight], axis=-1).astype(f32).T   # (nin, nx)

    # ---- block operator G: X_flat = Z @ G realizes the full recurrence -----
    # x_{t+1} = x0 @ A^{t+1} + sum_{s<=t} ud_{s+1} @ (W^T @ A^{t-s})
    powers = [jnp.eye(nx, dtype=f32)]
    for _ in range(T):
        powers.append(powers[-1] @ A)                   # A^j, applied on the right
    wt_pow = [WT @ powers[j] for j in range(T)]         # W^T @ A^j
    zeros = jnp.zeros((nin, nx), f32)

    cols = []
    for t in range(T):                                  # column block t -> x_{t+1}
        col = [powers[t + 1]]                           # x0 contribution
        for s in range(T):                              # ud_{s+1} contribution
            col.append(wt_pow[t - s] if s <= t else zeros)
        cols.append(jnp.concatenate(col, axis=0))       # (nx + T*nin, nx)
    G = jnp.concatenate(cols, axis=1)                   # (nx + T*nin, T*nx) = (128,256)

    # ---- packed input Z = [x0 | ud_1 | ... | ud_T] --------------------------
    UD = jnp.concatenate([U, D], axis=-1).astype(f32)               # (T, batch, nin)
    UD_flat = jnp.transpose(UD, (1, 0, 2)).reshape(batch, T * nin)  # (batch, T*nin)
    Z = jnp.concatenate([x0.astype(f32), UD_flat], axis=1)          # (batch, 128)

    vmem = pl.BlockSpec(memory_space=pltpu.MemorySpace.VMEM)
    X_flat = pl.pallas_call(
        ssm_kernel,
        out_shape=jax.ShapeDtypeStruct((batch, T * nx), f32),   # lane-dense (8, 256)
        in_specs=[vmem, vmem],
        out_specs=vmem,
    )(Z, G)

    X = X_flat.reshape(batch, T, nx).transpose(1, 0, 2)   # (T, batch, nx)
    Y = X[:, :, -1]                                       # (T, batch) — cheap XLA slice
    return X, Y


def ssm_reference(x0, U, D, a_weight, a_scalar, b_weight, e_weight):
    """Pure-JAX reference mirroring the PyTorch module step-by-step."""
    A = _effective_A(a_weight, a_scalar)

    def step(x, ud):
        u, d = ud
        x = x @ A + u @ b_weight.T + d @ e_weight.T
        return x, (x, x[:, -1])

    _, (X, Y) = jax.lax.scan(step, x0, (U, D))
    return X, Y


if __name__ == "__main__":
    # Small, deterministic shapes: nx=32, nu=8, nd=4, batch=8, T=8
    nx, nu, nd = 32, 8, 4
    batch, T = 8, 8

    key = jax.random.PRNGKey(0)
    k = jax.random.split(key, 7)
    # ConstrainedLinear params: torch.rand -> uniform [0, 1)
    a_weight = jax.random.uniform(k[0], (nx, nx), jnp.float32)
    a_scalar = jax.random.uniform(k[1], (nx, nx), jnp.float32)
    # nn.Linear(nu, nx, bias=False) / nn.Linear(nd, nx, bias=False) weights
    b_weight = jax.random.uniform(k[2], (nx, nu), jnp.float32, -0.3, 0.3)
    e_weight = jax.random.uniform(k[3], (nx, nd), jnp.float32, -0.3, 0.3)
    # Inputs
    x0 = jax.random.normal(k[4], (batch, nx), jnp.float32)
    U = jax.random.normal(k[5], (T, batch, nu), jnp.float32)
    D = jax.random.normal(k[6], (T, batch, nd), jnp.float32)

    X, Y = jax.jit(ssm_forward)(x0, U, D, a_weight, a_scalar, b_weight, e_weight)
    jax.block_until_ready((X, Y))

    X_ref, Y_ref = ssm_reference(x0, U, D, a_weight, a_scalar, b_weight, e_weight)
    assert X.shape == (T, batch, nx) and Y.shape == (T, batch)
    assert jnp.allclose(X, X_ref, atol=1e-4, rtol=1e-4), float(jnp.max(jnp.abs(X - X_ref)))
    assert jnp.allclose(Y, Y_ref, atol=1e-4, rtol=1e-4)

    print("KERNEL_OK")
</pallas_src>

<mosaic_0001>
module attributes {stable_mosaic.version = 11 : i64} {
  func.func @ssm_kernel(%arg0: memref<8x128xf32, #tpu.memory_space<vmem>>, %arg1: memref<128x256xf32, #tpu.memory_space<vmem>>, %arg2: memref<8x256xf32, #tpu.memory_space<vmem>>) attributes {dimension_semantics = [], scalar_prefetch = 0 : i64, scratch_operands = 0 : i64, tpu.core_type = #tpu.core_type<tc>} {
    %c0 = arith.constant 0 : index
    %c0_0 = arith.constant 0 : index
    %0 = vector.load %arg0[%c0, %c0_0] : memref<8x128xf32, #tpu.memory_space<vmem>>, vector<8x128xf32>
    %c0_1 = arith.constant 0 : index
    %c0_2 = arith.constant 0 : index
    %1 = vector.load %arg1[%c0_1, %c0_2] : memref<128x256xf32, #tpu.memory_space<vmem>>, vector<128x256xf32>
    %cst = arith.constant dense<0.000000e+00> : vector<8x256xf32>
    %2 = tpu.matmul %0, %1, %cst {dimension_numbers = #tpu.dot_dimension_numbers<[1], [0], [0], [1], [0, 0, 1, 1], [], []>, precision = #tpu.contract_precision<fp32>} : vector<8x128xf32>, vector<128x256xf32>, vector<8x256xf32> -> vector<8x256xf32>
    %c0_3 = arith.constant 0 : index
    %c0_4 = arith.constant 0 : index
    %3 = vector.load %arg2[%c0_3, %c0_4] : memref<8x256xf32, #tpu.memory_space<vmem>>, vector<8x256xf32>
    tpu.vector_store %arg2[%c0_3, %c0_4], %2 {strides = array<i32>} : memref<8x256xf32, #tpu.memory_space<vmem>>, vector<8x256xf32>,
    return
  }
}

</mosaic_0001>

<bundles_post_ra>
// kernel: ssm_forward.1
= control target key start
LH: loop header
LB: loop body
LE: loop exit
PB: predicated region body
PF: predicated region fallthrough
CT: control target
= control target key end

     0   :  { %v1489_v3 = vmov 0.0   ;;  %s1486_s1 = inlined_call_operand.vmem [shape: f32[128,256], index: 1, kind: input, shape index: {}]   ;;  %s1487_s0 = inlined_call_operand.vmem [shape: f32[8,128], index: 0, kind: input, shape index: {}]   ;;  %s1488_s2 = inlined_call_operand.vmem [shape: f32[8,256], index: 2, kind: output, shape index: {}]  }
   0x1   :  { %v13_v0 = vld [vmem:[%s1486_s1 + $0x8] sm:$0xff]  ;;  %v15_v1 = vld [vmem:[%s1486_s1 + $0x18] sm:$0xff]  ;;  %v12_v2 = vld [vmem:[%s1486_s1] sm:$0xff]  ;;  %140 = vmatprep.mubr.f32.mxu1 %v1489_v3  ;;  %617 = vmatprep.mubr.f32.mxu0 %v1489_v3 }
   0x2   :  { %v44_v4 = vand.u32 4294901760, %v13_v0  ;;  %v48_v5 = vand.u32 4294901760, %v15_v1  ;;  %v14_v6 = vld [vmem:[%s1486_s1 + $0x10] sm:$0xff]  ;;  %v46_v7 = vand.u32 4294901760, %v12_v2  ;;  %v17_v8 = vld [vmem:[%s1486_s1 + $0x28] sm:$0xff]  ;;  %v19_v9 = vld [vmem:[%s1486_s1 + $0x38] sm:$0xff] }
   0x3   :  { %v50_v10 = vand.u32 4294901760, %v14_v6  ;;  %v52_v11 = vand.u32 4294901760, %v17_v8  ;;  %v56_v12 = vand.u32 4294901760, %v19_v9  ;;  %v16_v13 = vld [vmem:[%s1486_s1 + $0x20] sm:$0xff]  ;;  %v18_v14 = vld [vmem:[%s1486_s1 + $0x30] sm:$0xff]  ;;  %v21_v15 = vld [vmem:[%s1486_s1 + $0x48] sm:$0xff] }
   0x4   :  { %v1153_v16 = vpack.c.bf16 %v48_v5, %v44_v4  ;;  %v23_v17 = vld [vmem:[%s1486_s1 + $0x58] sm:$0xff]  ;;  %v20_v18 = vld [vmem:[%s1486_s1 + $0x40] sm:$0xff]  ;;  %v22_v19 = vld [vmem:[%s1486_s1 + $0x50] sm:$0xff]  ;;  %v1164_v20 = vsub.f32 %v13_v0, %v44_v4  ;;  %v1177_v25 = vsub.f32 %v15_v1, %v48_v5  ;;  %v54_v26 = vand.u32 4294901760, %v16_v13 }
   0x5   :  { %v1166_v21 = vpack.c.bf16 %v50_v10, %v46_v7  ;;  %v1168_v22 = vpack.c.bf16 %v56_v12, %v52_v11  ;;  %v25_v23 = vld [vmem:[%s1486_s1 + $0x68] sm:$0xff]  ;;  %v27_v24 = vld [vmem:[%s1486_s1 + $0x78] sm:$0xff]  ;;  %v58_v27 = vand.u32 4294901760, %v18_v14  ;;  %v60_v28 = vand.u32 4294901760, %v21_v15  ;;  %v24_v37 = vld [vmem:[%s1486_s1 + $0x60] sm:$0xff] }
   0x6   :  { %906 = vmatprep.subr.bf16.mxu1 %v1153_v16  ;;  %1002 = vmatprep.subr.bf16.mxu0 %v1153_v16  ;;  %v1181_v29 = vsub.f32 %v12_v2, %v46_v7  ;;  %v64_v30 = vand.u32 4294901760, %v23_v17  ;;  %v62_v31 = vand.u32 4294901760, %v20_v18  ;;  %v66_v32 = vand.u32 4294901760, %v22_v19  ;;  %v26_v38 = vld [vmem:[%s1486_s1 + $0x70] sm:$0xff]  ;;  %v29_v39 = vld [vmem:[%s1486_s1 + $0x88] sm:$0xff]  ;;  %v31_v44 = vld [vmem:[%s1486_s1 + $0x98] sm:$0xff] }
   0x7   :  { %1513 = vst [vmem:[#allocation2_spill] sm:$0xff] %v1166_v21  ;;  %1514 = vst [vmem:[#allocation3_spill] sm:$0xff] %v1168_v22  ;;  %908 = vmatpush1.bf16.msra.mxu1 %v1166_v21  ;;  %1004 = vmatpush1.bf16.msra.mxu0 %v1166_v21  ;;  %v1184_v33 = vsub.f32 %v14_v6, %v50_v10  ;;  %v1188_v34 = vpack.c.bf16 %v58_v27, %v54_v26  ;;  %v68_v35 = vand.u32 4294901760, %v25_v23  ;;  %v28_v45 = vld [vmem:[%s1486_s1 + $0x80] sm:$0xff]  ;;  %v30_v46 = vld [vmem:[%s1486_s1 + $0x90] sm:$0xff] }
   0x8   :  { %910 = vmatprep.subr.bf16.mxu1 %v1168_v22  ;;  %1006 = vmatprep.subr.bf16.mxu0 %v1168_v22  ;;  %v72_v36 = vand.u32 4294901760, %v27_v24  ;;  %v1199_v40 = vsub.f32 %v17_v8, %v52_v11  ;;  %v1201_v41 = vsub.f32 %v19_v9, %v56_v12  ;;  %v1203_v42 = vsub.f32 %v16_v13, %v54_v26  ;;  %v33_v51 = vld [vmem:[%s1486_s1 + $0xa8] sm:$0xff]  ;;  %v35_v60 = vld [vmem:[%s1486_s1 + $0xb8] sm:$0xff]  ;;  %v32_v61 = vld [vmem:[%s1486_s1 + $0xa0] sm:$0xff] }
   0x9   :  { %1515 = vst [vmem:[#allocation4_spill] sm:$0xff] %v1188_v34  ;;  %v1205_v43 = vpack.c.bf16 %v64_v30, %v60_v28  ;;  %v1216_v47 = vsub.f32 %v18_v14, %v58_v27  ;;  %v1218_v48 = vsub.f32 %v21_v15, %v60_v28  ;;  %v1220_v49 = vsub.f32 %v23_v17, %v64_v30  ;;  %v34_v2 = vld [vmem:[%s1486_s1 + $0xb0] sm:$0xff]  ;;  %v37_v4 = vld [vmem:[%s1486_s1 + $0xc8] sm:$0xff]  ;;  %v39_v5 = vld [vmem:[%s1486_s1 + $0xd8] sm:$0xff] }
   0xa   :  { %1516 = vst [vmem:[#allocation5_spill] sm:$0xff] %v1203_v42  ;;  %v1222_v50 = vpack.c.bf16 %v66_v32, %v62_v31  ;;  %v1229_v52 = vsub.f32 %v20_v18, %v62_v31  ;;  %v70_v53 = vand.u32 4294901760, %v24_v37  ;;  %v74_v54 = vand.u32 4294901760, %v26_v38  ;;  %v36_v10 = vld [vmem:[%s1486_s1 + $0xc0] sm:$0xff]  ;;  %v38_v15 = vld [vmem:[%s1486_s1 + $0xd0] sm:$0xff]  ;;  %v41_v30 = vld [vmem:[%s1486_s1 + $0xe8] sm:$0xff] }
   0xb   :  { %1517 = vst [vmem:[#allocation6_spill] sm:$0xff] %v1205_v43  ;;  %1518 = vst [vmem:[#allocation7_spill] sm:$0xff] %v1216_v47  ;;  %912 = vmatpush1.bf16.msra.mxu1 %v1188_v34  ;;  %1008 = vmatpush1.bf16.msra.mxu0 %v1188_v34  ;;  %v76_v55 = vand.u32 4294901760, %v29_v39  ;;  %v1233_v56 = vpack.c.bf16 %v72_v36, %v68_v35  ;;  %v80_v57 = vand.u32 4294901760, %v31_v44  ;;  %v78_v58 = vand.u32 4294901760, %v28_v45  ;;  %v43_v31 = vld [vmem:[%s1486_s1 + $0xf8] sm:$0xff] }
   0xc   :  { %1519 = vst [vmem:[#allocation8_spill] sm:$0xff] %v1222_v50  ;;  %1520 = vst [vmem:[#allocation9_spill] sm:$0xff] %v1229_v52  ;;  %914 = vmatprep.subr.bf16.mxu1 %v1205_v43  ;;  %1010 = vmatprep.subr.bf16.mxu0 %v1205_v43  ;;  %v82_v59 = vand.u32 4294901760, %v30_v46  ;;  %v1241_v62 = vsub.f32 %v22_v19, %v66_v32  ;;  %v1243_v63 = vsub.f32 %v25_v23, %v68_v35  ;;  %v40_v32 = vld [vmem:[%s1486_s1 + $0xe0] sm:$0xff] }
   0xd   :  { %1521 = vst [vmem:[#allocation10_spill] sm:$0xff] %v1233_v56  ;;  %v1245_v0 = vsub.f32 %v27_v24, %v72_v36  ;;  %v84_v1 = vand.u32 4294901760, %v33_v51  ;;  %v1256_v6 = vpack.c.bf16 %v74_v54, %v70_v53  ;;  %v1258_v7 = vsub.f32 %v24_v37, %v70_v53 }
   0xe   :  { %1522 = vst [vmem:[#allocation11_spill] sm:$0xff] %v1241_v62  ;;  %v1260_v8 = vsub.f32 %v26_v38, %v74_v54  ;;  %v1262_v9 = vsub.f32 %v29_v39, %v76_v55  ;;  %v1269_v11 = vpack.c.bf16 %v80_v57, %v76_v55  ;;  %v1271_v12 = vsub.f32 %v31_v44, %v80_v57  ;;  %v42_v39 = vld [vmem:[%s1486_s1 + $0xf0] sm:$0xff]  ;;  %v11_v44 = vld [vmem:[%s1487_s0] sm:$0xff] }
   0xf   :  { %1523 = vst [vmem:[#allocation12_spill] sm:$0xff] %v1256_v6  ;;  %916 = vmatpush1.bf16.msra.mxu1 %v1222_v50  ;;  %1012 = vmatpush1.bf16.msra.mxu0 %v1222_v50  ;;  %v88_v13 = vand.u32 4294901760, %v35_v60  ;;  %v86_v14 = vand.u32 4294901760, %v32_v61  ;;  %v1278_v17 = vpack.c.bf16 %v82_v59, %v78_v58  ;;  %v90_v18 = vand.u32 4294901760, %v34_v2 }
  0x10   :  { %1524 = vst [vmem:[#allocation13_spill] sm:$0xff] %v1269_v11  ;;  %918 = vmatprep.subr.bf16.mxu1 %v1233_v56  ;;  %1014 = vmatprep.subr.bf16.mxu0 %v1233_v56  ;;  %v92_v19 = vand.u32 4294901760, %v37_v4  ;;  %v96_v23 = vand.u32 4294901760, %v39_v5  ;;  %v1280_v24 = vsub.f32 %v28_v45, %v78_v58  ;;  %v1282_v26 = vsub.f32 %v30_v46, %v82_v59 }
  0x11   :  { %1525 = vst [vmem:[#allocation14_spill] sm:$0xff] %v1278_v17  ;;  %v1284_v27 = vsub.f32 %v33_v51, %v84_v1  ;;  %v94_v28 = vand.u32 4294901760, %v36_v10  ;;  %v1295_v35 = vpack.c.bf16 %v88_v13, %v84_v1  ;;  %v1297_v36 = vsub.f32 %v35_v60, %v88_v13 }
  0x12   :  { %v1299_v37 = vsub.f32 %v32_v61, %v86_v14  ;;  %v98_v38 = vand.u32 4294901760, %v38_v15  ;;  %v1309_v45 = vpack.c.bf16 %v90_v18, %v86_v14  ;;  %v1311_v46 = vsub.f32 %v34_v2, %v90_v18 }
  0x13   :  { %1526 = vst [vmem:[#allocation15_spill] sm:$0xff] %v1284_v27  ;;  %1527 = vst [vmem:[#allocation16_spill] sm:$0xff] %v1295_v35  ;;  %920 = vmatpush1.bf16.msra.mxu1 %v1256_v6  ;;  %1016 = vmatpush1.bf16.msra.mxu0 %v1256_v6  ;;  %v1313_v51 = vpack.c.bf16 %v96_v23, %v92_v19  ;;  %v1317_v53 = vsub.f32 %v37_v4, %v92_v19  ;;  %v100_v54 = vand.u32 4294901760, %v41_v30 }
  0x14   :  { %1528 = vst [vmem:[#allocation17_spill] sm:$0xff] %v1309_v45  ;;  %922 = vmatprep.subr.bf16.mxu1 %v1269_v11  ;;  %1018 = vmatprep.subr.bf16.mxu0 %v1269_v11  ;;  %v104_v55 = vand.u32 4294901760, %v43_v31  ;;  %v102_v57 = vand.u32 4294901760, %v40_v32  ;;  %v106_v58 = vand.u32 4294901760, %v42_v39  ;;  %v154_v59 = vand.u32 4294901760, %v1164_v20 }
  0x15   :  { %1529 = vst [vmem:[#allocation18_spill] sm:$0xff] %v1313_v51  ;;  %1530 = vst [vmem:[#allocation19_spill] sm:$0xff] %v1317_v53  ;;  %v166_v60 = vand.u32 4294901760, %v1177_v25  ;;  %v1321_v61 = vand.u32 4294901760, %v11_v44  ;;  %v1323_v1 = vsub.f32 %v39_v5, %v96_v23  ;;  %v1325_v2 = vpack.c.bf16 %v98_v38, %v94_v28 }
  0x16   :  { %v1327_v13 = vsub.f32 %v36_v10, %v94_v28  ;;  %v1329_v14 = vsub.f32 %v38_v15, %v98_v38  ;;  %v1333_v4 = vsub.f32 %v41_v30, %v100_v54  ;;  %v155_v18 = vsub.f32 %v1164_v20, %v154_v59 }
  0x17   :  { %1531 = vst [vmem:[#allocation20_spill] sm:$0xff] %v1325_v2  ;;  %924 = vmatpush1.bf16.msra.mxu1 %v1278_v17  ;;  %1020 = vmatpush1.bf16.msra.mxu0 %v1278_v17  ;;  %v167_v19 = vsub.f32 %v1177_v25, %v166_v60  ;;  %v160_v3 = vand.u32 4294901760, %v1181_v29  ;;  %v1340_v5 = vpack.c.bf16 %v104_v55, %v100_v54  ;;  %v172_v15 = vand.u32 4294901760, %v1184_v33 }
  0x18   :  { %926 = vmatprep.subr.bf16.mxu1 %v1295_v35  ;;  %1022 = vmatprep.subr.bf16.mxu0 %v1295_v35  ;;  %v1343_v10 = vsub.f32 %v11_v44, %v1321_v61  ;;  %v178_v23 = vand.u32 4294901760, %v1199_v40  ;;  %v1347_v28 = vsub.f32 %v43_v31, %v104_v55  ;;  %v1349_v30 = vpack.c.bf16 %v106_v58, %v102_v57 }
  0x19   :  { %1532 = vst [vmem:[#allocation21_spill] sm:$0xff] %v1340_v5  ;;  %v161_v38 = vsub.f32 %v1181_v29, %v160_v3  ;;  %v190_v17 = vand.u32 4294901760, %v1201_v41  ;;  %v1353_v11 = vsub.f32 %v40_v32, %v102_v57  ;;  %v173_v35 = vsub.f32 %v1184_v33, %v172_v15 }
  0x1a   :  { %1533 = vst [vmem:[#allocation22_spill] sm:$0xff] %v1343_v10  ;;  %1534 = vst [vmem:[#allocation23_spill] sm:$0xff] %v1349_v30  ;;  %v143_v54 = vand.u32 4294901760, %v1343_v10  ;;  %v179_v44 = vsub.f32 %v1199_v40, %v178_v23  ;;  %v1360_v31 = vsub.f32 %v42_v39, %v106_v58  ;;  %v156_v55 = vand.u32 4294901760, %v155_v18 }
  0x1b   :  { %928 = vmatpush1.bf16.msra.mxu1 %v1309_v45  ;;  %1024 = vmatpush1.bf16.msra.mxu0 %v1309_v45  ;;  %v168_v6 = vand.u32 4294901760, %v167_v19  ;;  %v191_v56 = vsub.f32 %v1201_v41, %v190_v17  ;;  %v1033_v32 = vpack.c.bf16 %v166_v60, %v154_v59  ;;  %v162_v50 = vand.u32 4294901760, %v161_v38 }
  0x1c   :  { %930 = vmatprep.subr.bf16.mxu1 %v1313_v51  ;;  %1026 = vmatprep.subr.bf16.mxu0 %v1313_v51  ;;  %v144_v57 = vsub.f32 %v1343_v10, %v143_v54  ;;  %v184_v43 = vand.u32 4294901760, %v1203_v42  ;;  %v174_v34 = vand.u32 4294901760, %v173_v35  ;;  %v196_v22 = vand.u32 4294901760, %v1216_v47 }
  0x1d   :  { %v202_v39 = vand.u32 4294901760, %v1218_v48  ;;  %v214_v58 = vand.u32 4294901760, %v1220_v49  ;;  %v1035_v18 = vpack.c.bf16 %v172_v15, %v160_v3  ;;  %v180_v19 = vand.u32 4294901760, %v179_v44 }
  0x1e   :  { %v192_v45 = vand.u32 4294901760, %v191_v56  ;;  %v208_v21 = vand.u32 4294901760, %v1229_v52  ;;  %v937_v59 = vpack.c.bf16 %v168_v6, %v156_v55  ;;  %v185_v60 = vsub.f32 %v1203_v42, %v184_v43 }
  0x1f   :  { %932 = vmatpush1.bf16.msra.mxu1 %v1325_v2  ;;  %1028 = vmatpush1.bf16.msra.mxu0 %v1325_v2  ;;  %v197_v35 = vsub.f32 %v1216_v47, %v196_v22  ;;  %v220_v38 = vand.u32 4294901760, %v1241_v62  ;;  %v1037_v3 = vpack.c.bf16 %v190_v17, %v178_v23  ;;  %v203_v56 = vsub.f32 %v1218_v48, %v202_v39 }
  0x20   :  { %934 = vmatprep.subr.bf16.mxu1 %v1340_v5  ;;  %1030 = vmatprep.subr.bf16.mxu0 %v1340_v5  ;;  %v215_v15 = vsub.f32 %v1220_v49, %v214_v58  ;;  %v145_v44 = vand.u32 4294901760, %v144_v57  ;;  %v939_v10 = vpack.c.bf16 %v174_v34, %v162_v50  ;;  %v209_v2 = vsub.f32 %v1229_v52, %v208_v21 }
  0x21   :  { %v221_v6 = vsub.f32 %v1241_v62, %v220_v38  ;;  %v941_v55 = vpack.c.bf16 %v192_v45, %v180_v19  ;;  %v1039_v51 = vpack.c.bf16 %v196_v22, %v184_v43  ;;  %v226_v47 = vand.u32 4294901760, %v1243_v63 }
  0x22   :  { %v238_v42 = vand.u32 4294901760, %v1245_v0  ;;  %v186_v17 = vand.u32 4294901760, %v185_v60  ;;  %v198_v23 = vand.u32 4294901760, %v197_v35  ;;  %v204_v5 = vand.u32 4294901760, %v203_v56 }
  0x23   :  { %936 = vmatpush1.bf16.msra.mxu1 %v1349_v30  ;;  %1032 = vmatpush1.bf16.msra.mxu0 %v1349_v30  ;;  %v232_v57 = vand.u32 4294901760, %v1258_v7  ;;  %v216_v34 = vand.u32 4294901760, %v215_v15  ;;  %v227_v50 = vsub.f32 %v1243_v63, %v226_v47  ;;  %v244_v43 = vand.u32 4294901760, %v1260_v8 }
  0x24   :  { %938 = vmatprep.subr.bf16.mxu1 %v937_v59  ;;  %1034 = vmatprep.subr.bf16.mxu0 %v1033_v32  ;;  %v239_v22 = vsub.f32 %v1245_v0, %v238_v42  ;;  %v1041_v45 = vpack.c.bf16 %v214_v58, %v202_v39  ;;  %v210_v19 = vand.u32 4294901760, %v209_v2  ;;  %v222_v62 = vand.u32 4294901760, %v221_v6 }
  0x25   :  { %v250_v52 = vand.u32 4294901760, %v1262_v9  ;;  %v1043_v60 = vpack.c.bf16 %v220_v38, %v208_v21  ;;  %v228_v35 = vand.u32 4294901760, %v227_v50  ;;  %v233_v59 = vsub.f32 %v1258_v7, %v232_v57 }
  0x26   :  { %146 = vmatmul.mubr.f32.vlgmr.msra.gmra.mrb[0].mxu1 %v145_v44  ;;  %621 = vmatmul.mubr.f32.vlgmr.msra.gmra.mrb[0].mxu0 %v143_v54  ;;  %v240_v56 = vand.u32 4294901760, %v239_v22  ;;  %v943_v32 = vpack.c.bf16 %v198_v23, %v186_v17  ;;  %v245_v15 = vsub.f32 %v1260_v8, %v244_v43  ;;  %v262_v30 = vand.u32 4294901760, %v1271_v12 }
  0x27   :  { %940 = vmatpush1.bf16.msra.mxu1 %v939_v10  ;;  %1036 = vmatpush1.bf16.msra.mxu0 %v1035_v18  ;;  %v256_v39 = vand.u32 4294901760, %v1280_v24  ;;  %v945_v2 = vpack.c.bf16 %v216_v34, %v204_v5  ;;  %v251_v58 = vsub.f32 %v1262_v9, %v250_v52  ;;  %v268_v21 = vand.u32 4294901760, %v1282_v26 }
  0x28   :  { %942 = vmatprep.subr.bf16.mxu1 %v941_v55  ;;  %1038 = vmatprep.subr.bf16.mxu0 %v1037_v3  ;;  %v274_v54 = vand.u32 4294901760, %v1284_v27  ;;  %v947_v38 = vpack.c.bf16 %v222_v62, %v210_v19  ;;  %v263_v10 = vsub.f32 %v1271_v12, %v262_v30  ;;  %v1535_v44 = vmov 0.0  }
  0x29   :  { %v257_v18 = vsub.f32 %v1280_v24, %v256_v39  ;;  %376 = vmatprep.mubr.f32.mxu1 %v1535_v44  ;;  %787 = vmatprep.mubr.f32.mxu0 %v1535_v44  ;;  %v949_v6 = vpack.c.bf16 %v240_v56, %v228_v35  ;;  %v1045_v17 = vpack.c.bf16 %v238_v42, %v226_v47  ;;  %v234_v55 = vand.u32 4294901760, %v233_v59 }
  0x2a   :  { %v269_v5 = vsub.f32 %v1282_v26, %v268_v21  ;;  %v246_v3 = vand.u32 4294901760, %v245_v15  ;;  %v275_v23 = vsub.f32 %v1284_v27, %v274_v54  ;;  %v286_v62 = vand.u32 4294901760, %v1297_v36 }
  0x2b   :  { %944 = vmatpush1.bf16.msra.mxu1 %v943_v32  ;;  %1040 = vmatpush1.bf16.msra.mxu0 %v1039_v51  ;;  %v280_v34 = vand.u32 4294901760, %v1299_v37  ;;  %v252_v50 = vand.u32 4294901760, %v251_v58  ;;  %v264_v22 = vand.u32 4294901760, %v263_v10  ;;  %v292_v19 = vand.u32 4294901760, %v1311_v46 }
  0x2c   :  { %946 = vmatprep.subr.bf16.mxu1 %v945_v2  ;;  %1042 = vmatprep.subr.bf16.mxu0 %v1041_v45  ;;  %v298_v42 = vand.u32 4294901760, %v1317_v53  ;;  %v1047_v47 = vpack.c.bf16 %v244_v43, %v232_v57  ;;  %v1049_v35 = vpack.c.bf16 %v262_v30, %v250_v52  ;;  %v258_v56 = vand.u32 4294901760, %v257_v18 }
  0x2d   :  { %v287_v51 = vsub.f32 %v1297_v36, %v286_v62  ;;  %v270_v59 = vand.u32 4294901760, %v269_v5  ;;  %v281_v32 = vsub.f32 %v1299_v37, %v280_v34  ;;  %v293_v15 = vsub.f32 %v1311_v46, %v292_v19 }
  0x2e   :  { %v299_v27 = vsub.f32 %v1317_v53, %v298_v42  ;;  %v951_v45 = vpack.c.bf16 %v246_v3, %v234_v55  ;;  %v276_v2 = vand.u32 4294901760, %v275_v23  ;;  %v310_v58 = vand.u32 4294901760, %v1323_v1 }
  0x2f   :  { %948 = vmatpush1.bf16.msra.mxu1 %v947_v38  ;;  %1044 = vmatpush1.bf16.msra.mxu0 %v1043_v60  ;;  %v304_v10 = vand.u32 4294901760, %v1327_v13  ;;  %v953_v52 = vpack.c.bf16 %v264_v22, %v252_v50  ;;  %v288_v30 = vand.u32 4294901760, %v287_v51  ;;  %v316_v57 = vand.u32 4294901760, %v1329_v14 }
  0x30   :  { %950 = vmatprep.subr.bf16.mxu1 %v949_v6  ;;  %1046 = vmatprep.subr.bf16.mxu0 %v1045_v17  ;;  %v322_v43 = vand.u32 4294901760, %v1333_v4  ;;  %v1051_v18 = vpack.c.bf16 %v268_v21, %v256_v39  ;;  %v1053_v5 = vpack.c.bf16 %v286_v62, %v274_v54  ;;  %v311_v53 = vsub.f32 %v1323_v1, %v310_v58 }
  0x31   :  { %v955_v38 = vpack.c.bf16 %v270_v59, %v258_v56  ;;  %v282_v60 = vand.u32 4294901760, %v281_v32  ;;  %v294_v55 = vand.u32 4294901760, %v293_v15  ;;  %v300_v3 = vand.u32 4294901760, %v299_v27 }
  0x32   :  { %v305_v23 = vsub.f32 %v1327_v13, %v304_v10  ;;  %v317_v6 = vsub.f32 %v1329_v14, %v316_v57  ;;  %v334_v17 = vand.u32 4294901760, %v1347_v28  ;;  %v328_v50 = vand.u32 4294901760, %v1353_v11 }
  0x33   :  { %952 = vmatpush1.bf16.msra.mxu1 %v951_v45  ;;  %1048 = vmatpush1.bf16.msra.mxu0 %v1047_v47  ;;  %v957_v39 = vpack.c.bf16 %v288_v30, %v276_v2  ;;  %v312_v21 = vand.u32 4294901760, %v311_v53  ;;  %v323_v54 = vsub.f32 %v1333_v4, %v322_v43  ;;  %v340_v62 = vand.u32 4294901760, %v1360_v31 }
  0x34   :  { %954 = vmatprep.subr.bf16.mxu1 %v953_v52  ;;  %1050 = vmatprep.subr.bf16.mxu0 %v1049_v35  ;;  %v335_v27 = vsub.f32 %v1347_v28, %v334_v17  ;;  %v959_v22 = vpack.c.bf16 %v294_v55, %v282_v60  ;;  %v1055_v47 = vpack.c.bf16 %v292_v19, %v280_v34  ;;  %v306_v56 = vand.u32 4294901760, %v305_v23  ;;  %v1543_v55 = vld [vmem:[#allocation6_spill] sm:$0xff]  ;;  %v1544_v23 = vld [vmem:[#allocation8_spill] sm:$0xff] }
  0x35   :  { %v318_v51 = vand.u32 4294901760, %v317_v6  ;;  %v329_v59 = vsub.f32 %v1353_v11, %v328_v50  ;;  %v341_v32 = vsub.f32 %v1360_v31, %v340_v62  ;;  %v961_v35 = vpack.c.bf16 %v312_v21, %v300_v3  ;;  %v1546_v6 = vld [vmem:[#allocation12_spill] sm:$0xff] }
  0x36   :  { %v1057_v53 = vpack.c.bf16 %v310_v58, %v298_v42  ;;  %v324_v15 = vand.u32 4294901760, %v323_v54  ;;  %v336_v45 = vand.u32 4294901760, %v335_v27  ;;  %v1059_v52 = vpack.c.bf16 %v316_v57, %v304_v10  ;;  %v1536_v57 = vld [vmem:[#allocation2_spill] sm:$0xff]  ;;  %v1556_v54 = vld [vmem:[#allocation23_spill] sm:$0xff] }
  0x37   :  { %956 = vmatpush1.bf16.msra.mxu1 %v955_v38  ;;  %1052 = vmatpush1.bf16.msra.mxu0 %v1051_v18  ;;  %v963_v2 = vpack.c.bf16 %v318_v51, %v306_v56  ;;  %v330_v30 = vand.u32 4294901760, %v329_v59  ;;  %v342_v34 = vand.u32 4294901760, %v341_v32  ;;  %v1061_v18 = vpack.c.bf16 %v334_v17, %v322_v43  ;;  %v1537_v43 = vld [vmem:[#allocation5_spill] sm:$0xff] }
  0x38   :  { %958 = vmatprep.subr.bf16.mxu1 %v957_v39  ;;  %1054 = vmatprep.subr.bf16.mxu0 %v1053_v5  ;;  %v965_v19 = vpack.c.bf16 %v336_v45, %v324_v15  ;;  %v1063_v60 = vpack.c.bf16 %v340_v62, %v328_v50  ;;  %v969_v42 = vpack.c.bf16 %v1177_v25, %v1164_v20  ;;  %v1538_v20 = vld [vmem:[#allocation7_spill] sm:$0xff]  ;;  %v1557_v62 = vld [vmem:[#allocation22_spill] sm:$0xff] }
  0x39   :  { %v967_v38 = vpack.c.bf16 %v342_v34, %v330_v30  ;;  %v971_v58 = vpack.c.bf16 %v1184_v33, %v1181_v29  ;;  %v973_v10 = vpack.c.bf16 %v1201_v41, %v1199_v40  ;;  %v975_v25 = vpack.c.bf16 %v1538_v20, %v1537_v43  ;;  %v1539_v5 = vld [vmem:[#allocation3_spill] sm:$0xff]  ;;  %v1541_v33 = vld [vmem:[#allocation9_spill] sm:$0xff] }
  0x3a   :  { %v977_v29 = vpack.c.bf16 %v1220_v49, %v1218_v48  ;;  %v1542_v40 = vld [vmem:[#allocation11_spill] sm:$0xff]  ;;  %v981_v3 = vpack.c.bf16 %v1245_v0, %v1243_v63  ;;  %v983_v48 = vpack.c.bf16 %v1260_v8, %v1258_v7  ;;  %v1545_v49 = vld [vmem:[#allocation10_spill] sm:$0xff]  ;;  %v987_v17 = vpack.c.bf16 %v1282_v26, %v1280_v24  ;;  %v1547_v63 = vld [vmem:[#allocation13_spill] sm:$0xff] }
  0x3b   :  { %960 = vmatpush1.bf16.msra.mxu1 %v959_v22  ;;  %1056 = vmatpush1.bf16.msra.mxu0 %v1055_v47  ;;  %v979_v41 = vpack.c.bf16 %v1542_v40, %v1541_v33  ;;  %v1548_v0 = vld [vmem:[#allocation15_spill] sm:$0xff]  ;;  %v1549_v7 = vld [vmem:[#allocation14_spill] sm:$0xff]  ;;  %v991_v8 = vpack.c.bf16 %v1311_v46, %v1299_v37  ;;  %v1552_v24 = vld [vmem:[#allocation17_spill] sm:$0xff]  ;;  %v995_v26 = vpack.c.bf16 %v1329_v14, %v1327_v13 }
  0x3c   :  { %962 = vmatprep.subr.bf16.mxu1 %v961_v35  ;;  %1058 = vmatprep.subr.bf16.mxu0 %v1057_v53  ;;  %v989_v50 = vpack.c.bf16 %v1297_v36, %v1548_v0  ;;  %v1553_v36 = vld [vmem:[#allocation18_spill] sm:$0xff]  ;;  %v997_v21 = vpack.c.bf16 %v1347_v28, %v1333_v4  ;;  %v1554_v37 = vld [vmem:[#allocation20_spill] sm:$0xff]  ;;  %v999_v46 = vpack.c.bf16 %v1360_v31, %v1353_v11 }
  0x3f   :  { %964 = vmatpush1.bf16.msra.mxu1 %v963_v2  ;;  %1060 = vmatpush1.bf16.msra.mxu0 %v1059_v52 }
  0x40   :  { %966 = vmatprep.subr.bf16.mxu1 %v965_v19  ;;  %1062 = vmatprep.subr.bf16.mxu0 %v1061_v18 }
  0x43   :  { %968 = vmatpush1.bf16.msra.mxu1 %v967_v38  ;;  %1064 = vmatpush1.bf16.msra.mxu0 %v1063_v60 }
  0x44   :  { %970 = vmatprep.subr.bf16.mxu1 %v969_v42  ;;  %1066 = vmatprep.subr.bf16.mxu0 %v1153_v16  ;;  %v1540_v16 = vld [vmem:[#allocation4_spill] sm:$0xff] }
  0x46   :  { %378 = vmatmul.mubr.f32.vlgmr.msra.gmra.mrb[0].mxu1 %v1321_v61  ;;  %789 = vmatmul.mubr.f32.vlgmr.msra.gmra.mrb[0].mxu0 %v1321_v61 }
  0x47   :  { %972 = vmatpush1.bf16.msra.mxu1 %v971_v58  ;;  %1068 = vmatpush1.bf16.msra.mxu0 %v1536_v57 }
  0x48   :  { %974 = vmatprep.subr.bf16.mxu1 %v973_v10  ;;  %1070 = vmatprep.subr.bf16.mxu0 %v1539_v5 }
  0x49   :  { %512 = vmatprep.mubr.f32.mxu1 %v1535_v44  ;;  %891 = vmatprep.mubr.f32.mxu0 %v1535_v44  ;;  %v985_v44 = vpack.c.bf16 %v1271_v12, %v1262_v9  ;;  %v1550_v9 = vld [vmem:[#allocation16_spill] sm:$0xff]  ;;  %v1551_v12 = vld [vmem:[#allocation19_spill] sm:$0xff] }
  0x4a   :  { %v993_v39 = vpack.c.bf16 %v1323_v1, %v1551_v12  ;;  %v1555_v1 = vld [vmem:[#allocation21_spill] sm:$0xff] }
  0x4b   :  { %976 = vmatpush1.bf16.msra.mxu1 %v975_v25  ;;  %1072 = vmatpush1.bf16.msra.mxu0 %v1540_v16 }
  0x4c   :  { %978 = vmatprep.subr.bf16.mxu1 %v977_v29  ;;  %1074 = vmatprep.subr.bf16.mxu0 %v1543_v55 }
  0x4f   :  { %980 = vmatpush1.bf16.msra.mxu1 %v979_v41  ;;  %1076 = vmatpush1.bf16.msra.mxu0 %v1544_v23 }
  0x50   :  { %982 = vmatprep.subr.bf16.mxu1 %v981_v3  ;;  %1078 = vmatprep.subr.bf16.mxu0 %v1545_v49 }
  0x53   :  { %984 = vmatpush1.bf16.msra.mxu1 %v983_v48  ;;  %1080 = vmatpush1.bf16.msra.mxu0 %v1546_v6 }
  0x54   :  { %986 = vmatprep.subr.bf16.mxu1 %v985_v44  ;;  %1082 = vmatprep.subr.bf16.mxu0 %v1547_v63 }
  0x57   :  { %988 = vmatpush1.bf16.msra.mxu1 %v987_v17  ;;  %1084 = vmatpush1.bf16.msra.mxu0 %v1549_v7 }
  0x58   :  { %990 = vmatprep.subr.bf16.mxu1 %v989_v50  ;;  %1086 = vmatprep.subr.bf16.mxu0 %v1550_v9 }
  0x5b   :  { %992 = vmatpush1.bf16.msra.mxu1 %v991_v8  ;;  %1088 = vmatpush1.bf16.msra.mxu0 %v1552_v24 }
  0x5c   :  { %994 = vmatprep.subr.bf16.mxu1 %v993_v39  ;;  %1090 = vmatprep.subr.bf16.mxu0 %v1553_v36 }
  0x5f   :  { %996 = vmatpush1.bf16.msra.mxu1 %v995_v26  ;;  %1092 = vmatpush1.bf16.msra.mxu0 %v1554_v37 }
  0x60   :  { %998 = vmatprep.subr.bf16.mxu1 %v997_v21  ;;  %1094 = vmatprep.subr.bf16.mxu0 %v1555_v1 }
  0x63   :  { %1000 = vmatpush1.bf16.msra.mxu1 %v999_v46  ;;  %1096 = vmatpush1.bf16.msra.mxu0 %v1556_v54 }
  0x66   :  { %515 = vmatmul.mubr.f32.vlgmr.msra.gmra.mrb[0].mxu1 %v1557_v62  ;;  %893 = vmatmul.mubr.f32.vlgmr.msra.gmra.mrb[0].mxu0 %v1321_v61 }
 0x139   :  { %v516_v13 = vpop.f32.mrb[0].mxu1  ;;  %v894_v14 = vpop.f32.mrb[0].mxu0 }
 0x13a   :  { %v1097_v27 = vadd.f32 %v894_v14, %v516_v13  ;;  %v518_v4 = vpop.f32.mrb[1].mxu1  ;;  %v896_v28 = vpop.f32.mrb[1].mxu0 }
 0x13b   :  { %v1098_v22 = vadd.f32 %v896_v28, %v518_v4 }
 0x13c   :  { %899 = vst [vmem:[%s1488_s2] sm:$0xff] %v1097_v27 }
 0x13d   :  { %900 = vst [vmem:[%s1488_s2 + $0x8] sm:$0xff] %v1098_v22 }

</bundles_post_ra>
